<compile_context>
chip_gen: v5e
topology: v5e:2x2
jax: 0.10.0
libtpu: 0.0.40
codegen_flags: <defaults>
</compile_context>

<pallas_src>
import functools

import jax
import jax.numpy as jnp
from jax.experimental import pallas as pl
from jax.experimental.pallas import tpu as pltpu

_HIGHEST = jax.lax.Precision.HIGHEST


@functools.lru_cache(maxsize=None)
def _vmem_limit_bytes():
    """Per-generation scoped-VMEM limit (96 MiB on 128 MiB parts, ~48 MiB on v7x)."""
    try:
        cap = int(pltpu.get_tpu_info().vmem_capacity_bytes)
    except Exception:
        cap = 64 * 1024 * 1024
    return int(min(96 * 1024 * 1024, max(32 * 1024 * 1024, int(cap * 0.75))))


def _pick_flat_tile(total, cap):
    """Largest tile <= cap that is a multiple of 128 and divides total (else total)."""
    if total <= cap:
        return total
    t = (cap // 128) * 128
    while t >= 128:
        if total % t == 0:
            return t
        t -= 128
    return total


def _pick_group_s_tile(S, K, lane_target=4096):
    """S-tile for the grouping kernel; keeps K*s_tile lanes >= 128 and VMEM bounded."""
    cap = max(8, lane_target // max(K, 1))
    if S <= cap:
        return S
    if S % 128 == 0:
        return 128
    return S


# ----------------------------------------------------------------------------
# Kernel 1: farthest point sampling.  One grid step per batch element.
# xyz is viewed as [B, 3, rows, cols] (rows*cols = N) so the serial per-
# iteration N-wide work runs on full [8, N/8] vregs at large N.
# Output: sampled point coordinates new_xyz [B, 3, S].
# ----------------------------------------------------------------------------
def make_fps_kernel(num_samples, rows, cols):
    n = rows * cols

    def kernel(xyz_ref, out_ref, dist_ref, acc_ref):
        xyz = xyz_ref[0]                                           # [3, rows, cols]
        col = (jax.lax.broadcasted_iota(jnp.int32, (rows, cols), 0) * cols
               + jax.lax.broadcasted_iota(jnp.int32, (rows, cols), 1))
        col_s = jax.lax.broadcasted_iota(jnp.int32, (1, num_samples), 1)
        dist_ref[...] = jnp.full((rows, cols), 1e10, dtype=jnp.float32)
        acc_ref[...] = jnp.zeros_like(acc_ref)

        def body(i, farthest):
            sel = (col == farthest)                                # [rows, cols]
            w = jnp.where(sel[None, :, :], xyz, 0.0)               # [3, rows, cols]
            t = jnp.sum(w, axis=2, keepdims=True)                  # [3, rows, 1]
            centroid = jnp.sum(t, axis=1, keepdims=True)           # [3, 1, 1]
            acc_ref[...] = jnp.where(col_s == i, centroid[:, :, 0], acc_ref[...])
            d = jnp.sum((xyz - centroid) ** 2, axis=0)             # [rows, cols]
            nd = jnp.minimum(dist_ref[...], d)
            dist_ref[...] = nd
            m = jnp.max(nd)
            far = jnp.min(jnp.where(nd == m, col, n))              # first argmax
            return far

        jax.lax.fori_loop(0, num_samples, body, jnp.int32(0))
        out_ref[0] = acc_ref[...]

    return kernel


def farthest_point_sample_pallas(xyz_b3n, num_samples):
    B, _, N = xyz_b3n.shape
    rows = 8 if (N % 8 == 0 and N // 8 >= 128) else 1
    cols = N // rows
    xr = xyz_b3n.reshape(B, 3, rows, cols)
    return pl.pallas_call(
        make_fps_kernel(num_samples, rows, cols),
        out_shape=jax.ShapeDtypeStruct((B, 3, num_samples), jnp.float32),
        grid_spec=pltpu.PrefetchScalarGridSpec(
            num_scalar_prefetch=0,
            grid=(B,),
            in_specs=[pl.BlockSpec((1, 3, rows, cols), lambda b: (b, 0, 0, 0))],
            out_specs=pl.BlockSpec((1, 3, num_samples), lambda b: (b, 0, 0)),
            scratch_shapes=[pltpu.VMEM((rows, cols), jnp.float32),
                            pltpu.VMEM((3, num_samples), jnp.float32)]),
        compiler_params=pltpu.CompilerParams(
            dimension_semantics=("parallel",),
            vmem_limit_bytes=_vmem_limit_bytes()),
    )(xr)


# ----------------------------------------------------------------------------
# Kernel 2: ball-query grouping (query_ball_point + index_points + relative xyz
# + channel concat) for one radius.  Grid = (B, S/s_tile).
#   src [B, D+3, N] (features first, xyz last), new_xyz [B, 3, S]
#   out [B, D+3, K*S] flat, column ordering (s_tile_block, k, s_within_tile).
# Matches this module's query_ball_point: index N-1 doubles as the
# out-of-radius marker, pads with the smallest in-radius index.
# ----------------------------------------------------------------------------
def make_group_kernel(radius, K, feat_dim, N, s_tile):
    r2 = float(radius) * float(radius)

    def kernel(src_ref, new_ref, out_ref):
        src = src_ref[0]                                           # [C, N]
        newc = new_ref[0]                                          # [3, s_tile]
        coords = src[feat_dim:feat_dim + 3, :]                     # [3, N]
        coords_t = jnp.transpose(coords)                           # [N, 3]

        # squared distance [N, s_tile] via 3 VPU subtract-square-accumulate passes
        d = jnp.zeros((N, s_tile), jnp.float32)
        for c in range(3):
            diff = coords_t[:, c:c + 1] - newc[c:c + 1, :]
            d = d + diff * diff

        row_n = jax.lax.broadcasted_iota(jnp.int32, (N, s_tile), 0)
        elig = jnp.logical_and(d <= r2, row_n < N - 1)
        elig_f = elig.astype(jnp.float32)

        # inclusive prefix count along N: O(N log N) shifted adds (no N^2 matmul)
        rank = elig_f
        off = 1
        while off < N:
            shifted = jnp.concatenate(
                [jnp.zeros((off, s_tile), jnp.float32), rank[:N - off, :]], axis=0)
            rank = rank + shifted
            off *= 2
        cnt = rank[N - 1:N, :]                                     # [1, s_tile]

        h0 = elig_f * (rank == 1.0).astype(jnp.float32)
        last1 = (row_n == N - 1).astype(jnp.float32)
        hpad = jnp.where(cnt > 0.0, h0, last1)                     # pad selector

        # batched one-hot selectors for all K neighbour slots -> one gather matmul
        sels = []
        for k in range(K):
            hk = elig_f * (rank == float(k + 1)).astype(jnp.float32)
            sels.append(jnp.where(cnt >= float(k + 1), hk, hpad))
        G = jnp.concatenate(sels, axis=1)                          # [N, K*s_tile]
        gathered = jnp.dot(src, G, preferred_element_type=jnp.float32,
                           precision=_HIGHEST)                     # [C, K*s_tile]

        if feat_dim > 0:
            sub = jnp.concatenate(
                [jnp.zeros((feat_dim, s_tile), jnp.float32), newc], axis=0)
        else:
            sub = newc
        sub_t = jnp.concatenate([sub] * K, axis=1)                 # [C, K*s_tile]
        out_ref[0] = gathered - sub_t

    return kernel


def group_points_pallas(src, new_xyz, radius, K, feat_dim, s_tile=None):
    B, C_src, N = src.shape
    S = new_xyz.shape[2]
    if s_tile is None:
        s_tile = _pick_group_s_tile(S, K)
    n_st = S // s_tile
    grouped = pl.pallas_call(
        make_group_kernel(radius, K, feat_dim, N, s_tile),
        out_shape=jax.ShapeDtypeStruct((B, C_src, K * S), jnp.float32),
        grid_spec=pltpu.PrefetchScalarGridSpec(
            num_scalar_prefetch=0,
            grid=(B, n_st),
            in_specs=[pl.BlockSpec((1, C_src, N), lambda b, st: (b, 0, 0)),
                      pl.BlockSpec((1, 3, s_tile), lambda b, st: (b, 0, st))],
            out_specs=pl.BlockSpec((1, C_src, K * s_tile),
                                   lambda b, st: (b, 0, st))),
        compiler_params=pltpu.CompilerParams(
            dimension_semantics=("parallel", "arbitrary"),
            vmem_limit_bytes=_vmem_limit_bytes()),
    )(src, new_xyz)
    return grouped, s_tile


# ----------------------------------------------------------------------------
# Kernel 3: one MLP layer = (previous layer's BN + ReLU) + Conv2d(1x1) + per-
# block partial sums for this layer's BatchNorm statistics.
# Grid = (B, L/t_tile); every grid axis is independent ("parallel"-safe).
# ----------------------------------------------------------------------------
def _conv_and_stats(h, w_ref, b_ref, act_ref, st_ref):
    y = (jnp.dot(w_ref[...], h, preferred_element_type=jnp.float32,
                 precision=_HIGHEST) + b_ref[...])                 # [C_out, T]
    act_ref[0] = y
    s1 = jnp.sum(y, axis=1, keepdims=True)                         # [C_out, 1]
    s2 = jnp.sum(y * y, axis=1, keepdims=True)                     # [C_out, 1]
    st_ref[0, 0] = jnp.concatenate([s1, s2], axis=1)               # [C_out, 2]


def make_layer_kernel(apply_prev_bn):
    if apply_prev_bn:
        def kernel(x_ref, aff_ref, w_ref, b_ref, act_ref, st_ref):
            aff = aff_ref[...]                                     # [C_in, 2]
            h = jnp.maximum(x_ref[0] * aff[:, 0:1] + aff[:, 1:2], 0.0)
            _conv_and_stats(h, w_ref, b_ref, act_ref, st_ref)
    else:
        def kernel(x_ref, w_ref, b_ref, act_ref, st_ref):
            _conv_and_stats(x_ref[0], w_ref, b_ref, act_ref, st_ref)
    return kernel


def conv_bn_stats_pallas(x, w, b, prev_affine, t_cap=4096):
    B, C_in, L = x.shape
    C_out = w.shape[0]
    t_tile = _pick_flat_tile(L, t_cap)
    n_t = L // t_tile
    apply_prev = prev_affine is not None

    in_specs = [pl.BlockSpec((1, C_in, t_tile), lambda bb, tt: (bb, 0, tt))]
    args = [x]
    if apply_prev:
        in_specs.append(pl.BlockSpec((C_in, 2), lambda bb, tt: (0, 0)))
        args.append(prev_affine)
    in_specs += [pl.BlockSpec((C_out, C_in), lambda bb, tt: (0, 0)),
                 pl.BlockSpec((C_out, 1), lambda bb, tt: (0, 0))]
    args += [w, b]

    act, stats = pl.pallas_call(
        make_layer_kernel(apply_prev),
        out_shape=(jax.ShapeDtypeStruct((B, C_out, L), jnp.float32),
                   jax.ShapeDtypeStruct((B, n_t, C_out, 2), jnp.float32)),
        grid_spec=pltpu.PrefetchScalarGridSpec(
            num_scalar_prefetch=0,
            grid=(B, n_t),
            in_specs=in_specs,
            out_specs=[pl.BlockSpec((1, C_out, t_tile), lambda bb, tt: (bb, 0, tt)),
                       pl.BlockSpec((1, 1, C_out, 2), lambda bb, tt: (bb, tt, 0, 0))]),
        compiler_params=pltpu.CompilerParams(
            dimension_semantics=("parallel", "arbitrary"),
            vmem_limit_bytes=_vmem_limit_bytes()),
    )(*args)
    return act, stats


def finalize_bn_affine(stats, gamma, beta, count, eps=1e-5):
    """Tiny XLA op: turn per-(b,tile) partial sums into a fused (scale, shift)."""
    tot = jnp.sum(stats, axis=(0, 1))                              # [C, 2]
    mean = tot[:, 0:1] / count
    ex2 = tot[:, 1:2] / count
    var = jnp.maximum(ex2 - mean * mean, 0.0)
    rstd = jax.lax.rsqrt(var + eps)
    scale = gamma * rstd
    shift = beta - mean * scale
    return jnp.concatenate([scale, shift], axis=1)                 # [C, 2]


# ----------------------------------------------------------------------------
# Kernel 4: final BN + ReLU + max over the neighbour axis K (done with K-1
# static-slice maxima, no relayout).  Grid = (B, S/s_tile).
# ----------------------------------------------------------------------------
def make_apply_max_kernel(K, s_tile):
    def kernel(x_ref, aff_ref, out_ref):
        aff = aff_ref[...]                                         # [C, 2]
        h = jnp.maximum(x_ref[0] * aff[:, 0:1] + aff[:, 1:2], 0.0)  # [C, K*s_tile]
        m = h[:, 0:s_tile]
        for k in range(1, K):
            m = jnp.maximum(m, h[:, k * s_tile:(k + 1) * s_tile])
        out_ref[0] = m
    return kernel


def apply_bn_relu_max_pallas(x, affine, K, s_tile):
    B, C, L = x.shape
    n_st = L // (K * s_tile)
    S = n_st * s_tile
    return pl.pallas_call(
        make_apply_max_kernel(K, s_tile),
        out_shape=jax.ShapeDtypeStruct((B, C, S), jnp.float32),
        grid_spec=pltpu.PrefetchScalarGridSpec(
            num_scalar_prefetch=0,
            grid=(B, n_st),
            in_specs=[pl.BlockSpec((1, C, K * s_tile), lambda b, st: (b, 0, st)),
                      pl.BlockSpec((C, 2), lambda b, st: (0, 0))],
            out_specs=pl.BlockSpec((1, C, s_tile), lambda b, st: (b, 0, st))),
        compiler_params=pltpu.CompilerParams(
            dimension_semantics=("parallel", "arbitrary"),
            vmem_limit_bytes=_vmem_limit_bytes()),
    )(x, affine)


# ----------------------------------------------------------------------------
# Wrappers mirroring PointNetSetAbstractionMsg.forward
# ----------------------------------------------------------------------------
def msg_mlp_forward(grouped, layer_params, K, s_tile):
    B, _, L = grouped.shape
    x, affine = grouped, None
    for (w, b, gamma, beta) in layer_params:
        x, stats = conv_bn_stats_pallas(x, w, b, affine)
        affine = finalize_bn_affine(stats, gamma, beta, float(B * L))
    return apply_bn_relu_max_pallas(x, affine, K, s_tile)


def pointnet_sa_msg_forward(params, radius_list, nsample_list,
                            xyz_bcn, features_bdn, num_points):
    new_xyz = farthest_point_sample_pallas(xyz_bcn, num_points)    # [B, 3, S]
    if features_bdn is not None:
        src = jnp.concatenate([features_bdn, xyz_bcn], axis=1)     # [B, D+3, N]
        feat_dim = features_bdn.shape[1]
    else:
        src = xyz_bcn
        feat_dim = 0

    outs = []
    for i, radius in enumerate(radius_list):
        K = nsample_list[i]
        grouped, s_tile = group_points_pallas(src, new_xyz, radius, K, feat_dim)
        outs.append(msg_mlp_forward(grouped, params[i], K, s_tile))
    return new_xyz, jnp.concatenate(outs, axis=1)


# ----------------------------------------------------------------------------
# Pure-JAX reference mirroring the PyTorch module (same deterministic FPS start
# index 0; this module's query_ball_point uses N-1 as the out-of-radius marker;
# BN uses biased training-mode statistics, matching the PyTorch training
# forward; the boundary d<=r^2 uses the direct squared distance, which agrees
# with square_distance up to float rounding).
# ----------------------------------------------------------------------------
def reference_forward(params, radius_list, nsample_list,
                      xyz_bcn, feat_bdn, num_points):
    xyz = jnp.transpose(xyz_bcn, (0, 2, 1))                        # [B, N, 3]
    feat = None if feat_bdn is None else jnp.transpose(feat_bdn, (0, 2, 1))
    B, N, _ = xyz.shape
    S = num_points

    def fps(points):
        def body(i, state):
            distance, farthest, cent = state
            centroid = jnp.take_along_axis(points, farthest[:, None, None], axis=1)
            d = jnp.sum((points - centroid) ** 2, -1)
            distance = jnp.minimum(distance, d)
            cent = cent.at[:, i].set(farthest)
            new_far = jnp.argmax(distance, axis=-1).astype(jnp.int32)
            return distance, new_far, cent
        state0 = (jnp.full((B, N), 1e10, jnp.float32),
                  jnp.zeros((B,), jnp.int32),
                  jnp.zeros((B, S), jnp.int32))
        _, _, cent = jax.lax.fori_loop(0, S, body, state0)
        return cent

    idx = fps(xyz)                                                 # [B, S]
    new_xyz = jnp.take_along_axis(xyz, idx[..., None], axis=1)     # [B, S, 3]

    outs = []
    for i, radius in enumerate(radius_list):
        K = nsample_list[i]
        diff = new_xyz[:, :, None, :] - xyz[:, None, :, :]         # [B,S,N,3]
        d = diff[..., 0] ** 2 + diff[..., 1] ** 2 + diff[..., 2] ** 2
        arange_n = jnp.arange(N, dtype=jnp.int32)[None, None, :]
        gi = jnp.where(d > radius * radius, N - 1, arange_n)
        gi = jnp.sort(gi, axis=-1)[:, :, :K]
        gfirst = gi[:, :, :1]
        gi = jnp.where(gi == N - 1, gfirst, gi)                    # [B, S, K]
        grouped_xyz = jnp.take_along_axis(xyz[:, None, :, :], gi[..., None],
                                          axis=2)                  # [B,S,K,3]
        grouped_xyz = grouped_xyz - new_xyz[:, :, None, :]
        if feat is not None:
            gfeat = jnp.take_along_axis(feat[:, None, :, :], gi[..., None],
                                        axis=2)                    # [B,S,K,D]
            g = jnp.concatenate([gfeat, grouped_xyz], axis=-1)
        else:
            g = grouped_xyz
        x = jnp.transpose(g, (0, 3, 2, 1))                         # [B,C,K,S]
        for (w, bb, gamma, beta) in params[i]:
            y = (jnp.einsum('oc,bcks->boks', w, x, precision=_HIGHEST)
                 + bb[None, :, :, None])
            mean = jnp.mean(y, axis=(0, 2, 3), keepdims=True)
            var = jnp.maximum(
                jnp.mean(y * y, axis=(0, 2, 3), keepdims=True) - mean * mean, 0.0)
            yhat = (y - mean) * jax.lax.rsqrt(var + 1e-5)
            x = jnp.maximum(gamma[None, :, :, None] * yhat
                            + beta[None, :, :, None], 0.0)
        outs.append(jnp.max(x, axis=2))                            # [B, C, S]
    return (jnp.transpose(new_xyz, (0, 2, 1)),
            jnp.concatenate(outs, axis=1))


def init_params(key, in_channel, mlp_list):
    """Deterministic synthetic parameters for the Conv2d(1x1)+BN blocks."""
    params = []
    for i, mlp in enumerate(mlp_list):
        layers = []
        prev = in_channel
        for j, out_c in enumerate(mlp):
            kw, kb = jax.random.split(jax.random.fold_in(key, i * 97 + j))
            w = jax.random.normal(kw, (out_c, prev), jnp.float32) * 0.1
            b = jax.random.normal(kb, (out_c, 1), jnp.float32) * 0.1
            gamma = 1.0 + 0.05 * jnp.arange(out_c, dtype=jnp.float32).reshape(out_c, 1)
            beta = 0.02 * jnp.arange(out_c, dtype=jnp.float32).reshape(out_c, 1)
            layers.append((w, b, gamma, beta))
            prev = out_c
        params.append(layers)
    return params


if __name__ == "__main__":
    key = jax.random.PRNGKey(0)
    B, N = 2, 64                  # batch, input points
    num_points = 16               # S: sampled centroids
    D = 6                         # input feature channels
    radius_list = [0.4, 0.8]
    nsample_list = [8, 16]
    mlp_list = [[16, 32], [16, 32, 64]]
    in_channel = D + 3

    kx, kf, kp = jax.random.split(key, 3)
    xyz = jax.random.normal(kx, (B, 3, N), jnp.float32)        # [B, 3, N]
    feats = jax.random.normal(kf, (B, D, N), jnp.float32)      # [B, D, N]
    params = init_params(kp, in_channel, mlp_list)

    new_xyz, out = pointnet_sa_msg_forward(
        params, radius_list, nsample_list, xyz, feats, num_points)
    new_xyz = jax.block_until_ready(new_xyz)
    out = jax.block_until_ready(out)

    ref_xyz, ref_out = reference_forward(
        params, radius_list, nsample_list, xyz, feats, num_points)
    ref_xyz = jax.block_until_ready(ref_xyz)
    ref_out = jax.block_until_ready(ref_out)

    assert new_xyz.shape == (B, 3, num_points), new_xyz.shape
    assert out.shape == (B, sum(m[-1] for m in mlp_list), num_points), out.shape
    assert jnp.allclose(new_xyz, ref_xyz, atol=1e-5, rtol=1e-5), \
        float(jnp.max(jnp.abs(new_xyz - ref_xyz)))
    assert jnp.allclose(out, ref_out, atol=3e-3, rtol=3e-3), \
        float(jnp.max(jnp.abs(out - ref_out)))

    print("KERNEL_OK")
</pallas_src>

<mosaic_0001>
module attributes {stable_mosaic.version = 11 : i64} {
  func.func @kernel(%arg0: i32, %arg1: memref<1x3x1x64xf32, #tpu.memory_space<vmem>>, %arg2: memref<1x3x16xf32, #tpu.memory_space<vmem>>, %arg3: memref<1x64xf32, #tpu.memory_space<vmem>>, %arg4: memref<3x16xf32, #tpu.memory_space<vmem>>) attributes {dimension_semantics = [#tpu.dimension_semantics<parallel>], iteration_bounds = array<i64: 2>, scalar_prefetch = 0 : i64, scratch_operands = 2 : i64, tpu.core_type = #tpu.core_type<tc>, window_params = [{transform_indices = @transform_0, window_bounds = array<i64: 1, 3, 1, 64>}, {transform_indices = @transform_1, window_bounds = array<i64: 1, 3, 16>}]} {
    %c0 = arith.constant 0 : index
    %c0_0 = arith.constant 0 : index
    %c0_1 = arith.constant 0 : index
    %c0_2 = arith.constant 0 : index
    %0 = vector.load %arg1[%c0, %c0_0, %c0_1, %c0_2] : memref<1x3x1x64xf32, #tpu.memory_space<vmem>>, vector<1x3x1x64xf32>
    %1 = vector.shape_cast %0 : vector<1x3x1x64xf32> to vector<3x1x64xf32>
    %2 = tpu.iota {dimensions = array<i32: 0>} : vector<1x64xi32>
    %c64_i32 = arith.constant 64 : i32
    %3 = vector.broadcast %c64_i32 : i32 to vector<1x64xi32>
    %4 = arith.muli %2, %3 : vector<1x64xi32>
    %5 = tpu.iota {dimensions = array<i32: 1>} : vector<1x64xi32>
    %6 = arith.addi %4, %5 : vector<1x64xi32>
    %7 = tpu.iota {dimensions = array<i32: 1>} : vector<1x16xi32>
    %cst = arith.constant 1.000000e+10 : f32
    %8 = vector.broadcast %cst : f32 to vector<1x64xf32>
    %c0_3 = arith.constant 0 : index
    %c0_4 = arith.constant 0 : index
    %9 = vector.load %arg3[%c0_3, %c0_4] : memref<1x64xf32, #tpu.memory_space<vmem>>, vector<1x64xf32>
    tpu.vector_store %arg3[%c0_3, %c0_4], %8 {strides = array<i32>} : memref<1x64xf32, #tpu.memory_space<vmem>>, vector<1x64xf32>,
    %cst_5 = arith.constant 0.000000e+00 : f32
    %10 = vector.broadcast %cst_5 : f32 to vector<3x16xf32>
    %c0_6 = arith.constant 0 : index
    %c0_7 = arith.constant 0 : index
    %11 = vector.load %arg4[%c0_6, %c0_7] : memref<3x16xf32, #tpu.memory_space<vmem>>, vector<3x16xf32>
    tpu.vector_store %arg4[%c0_6, %c0_7], %10 {strides = array<i32>} : memref<3x16xf32, #tpu.memory_space<vmem>>, vector<3x16xf32>,
    %c0_i32 = arith.constant 0 : i32
    %c0_i32_8 = arith.constant 0 : i32
    %c16_i32 = arith.constant 16 : i32
    %12 = arith.addi %c0_i32_8, %c16_i32 : i32
    %c1_i32 = arith.constant 1 : i32
    %13 = scf.for %arg5 = %c0_i32_8 to %12 step %c1_i32 iter_args(%arg6 = %c0_i32) -> (i32)  : i32 {
      %18 = vector.broadcast %arg6 : i32 to vector<1x64xi32>
      %19 = arith.cmpi eq, %6, %18 : vector<1x64xi32>
      %20 = vector.shape_cast %19 : vector<1x64xi1> to vector<1x1x64xi1>
      %cst_15 = arith.constant 0.000000e+00 : f32
      %21 = vector.shape_cast %20 : vector<1x1x64xi1> to vector<1x1x64xi1>
      %22 = vector.broadcast %21 : vector<1x1x64xi1> to vector<3x1x64xi1>
      %23 = vector.broadcast %cst_15 : f32 to vector<3x1x64xf32>
      %24 = arith.select %22, %1, %23 : vector<3x1x64xi1>, vector<3x1x64xf32>
      %cst_16 = arith.constant dense<0.000000e+00> : vector<3x1xf32>
      %25 = vector.multi_reduction <add>, %24, %cst_16 [2] : vector<3x1x64xf32> to vector<3x1xf32>
      %26 = vector.shape_cast %25 : vector<3x1xf32> to vector<3x1x1xf32>
      %cst_17 = arith.constant dense<0.000000e+00> : vector<3x1xf32>
      %27 = vector.multi_reduction <add>, %26, %cst_17 [1] : vector<3x1x1xf32> to vector<3x1xf32>
      %28 = vector.shape_cast %27 : vector<3x1xf32> to vector<3x1x1xf32>
      %29 = vector.broadcast %arg5 : i32 to vector<1x16xi32>
      %30 = arith.cmpi eq, %7, %29 : vector<1x16xi32>
      %31 = vector.shape_cast %28 : vector<3x1x1xf32> to vector<3x1xf32>
      %c0_18 = arith.constant 0 : index
      %c0_19 = arith.constant 0 : index
      %32 = vector.load %arg4[%c0_18, %c0_19] : memref<3x16xf32, #tpu.memory_space<vmem>>, vector<3x16xf32>
      %33 = vector.shape_cast %30 : vector<1x16xi1> to vector<1x16xi1>
      %34 = vector.broadcast %33 : vector<1x16xi1> to vector<3x16xi1>
      %35 = vector.shape_cast %31 : vector<3x1xf32> to vector<3x1xf32>
      %36 = vector.broadcast %35 : vector<3x1xf32> to vector<3x16xf32>
      %37 = arith.select %34, %36, %32 : vector<3x16xi1>, vector<3x16xf32>
      %c0_20 = arith.constant 0 : index
      %c0_21 = arith.constant 0 : index
      %38 = vector.load %arg4[%c0_20, %c0_21] : memref<3x16xf32, #tpu.memory_space<vmem>>, vector<3x16xf32>
      tpu.vector_store %arg4[%c0_20, %c0_21], %37 {strides = array<i32>} : memref<3x16xf32, #tpu.memory_space<vmem>>, vector<3x16xf32>,
      %39 = vector.broadcast %28 : vector<3x1x1xf32> to vector<3x1x64xf32>
      %40 = arith.subf %1, %39 : vector<3x1x64xf32>
      %41 = arith.mulf %40, %40 : vector<3x1x64xf32>
      %cst_22 = arith.constant dense<0.000000e+00> : vector<1x64xf32>
      %42 = vector.multi_reduction <add>, %41, %cst_22 [0] : vector<3x1x64xf32> to vector<1x64xf32>
      %c0_23 = arith.constant 0 : index
      %c0_24 = arith.constant 0 : index
      %43 = vector.load %arg3[%c0_23, %c0_24] : memref<1x64xf32, #tpu.memory_space<vmem>>, vector<1x64xf32>
      %44 = arith.minimumf %43, %42 : vector<1x64xf32>
      %c0_25 = arith.constant 0 : index
      %c0_26 = arith.constant 0 : index
      %45 = vector.load %arg3[%c0_25, %c0_26] : memref<1x64xf32, #tpu.memory_space<vmem>>, vector<1x64xf32>
      tpu.vector_store %arg3[%c0_25, %c0_26], %44 {strides = array<i32>} : memref<1x64xf32, #tpu.memory_space<vmem>>, vector<1x64xf32>,
      %46 = vector.shape_cast %44 : vector<1x64xf32> to vector<1x1x64xf32>
      %cst_27 = arith.constant dense<0xFF800000> : vector<1xf32>
      %47 = vector.multi_reduction <maximumf>, %46, %cst_27 [1, 2] : vector<1x1x64xf32> to vector<1xf32>
      %48 = vector.shape_cast %47 : vector<1xf32> to vector<1x1x1xf32>
      %49 = vector.extract %48[0, 0, 0] : f32 from vector<1x1x1xf32>
      %50 = vector.broadcast %49 : f32 to vector<1x64xf32>
      %51 = arith.cmpf oeq, %44, %50 : vector<1x64xf32>
      %c64_i32_28 = arith.constant 64 : i32
      %52 = vector.broadcast %c64_i32_28 : i32 to vector<1x64xi32>
      %53 = arith.select %51, %6, %52 : vector<1x64xi1>, vector<1x64xi32>
      %54 = vector.shape_cast %53 : vector<1x64xi32> to vector<1x1x64xi32>
      %cst_29 = arith.constant dense<2147483647> : vector<1xi32>
      %55 = vector.multi_reduction <minsi>, %54, %cst_29 [1, 2] : vector<1x1x64xi32> to vector<1xi32>
      %56 = vector.shape_cast %55 : vector<1xi32> to vector<1x1x1xi32>
      %57 = vector.extract %56[0, 0, 0] : i32 from vector<1x1x1xi32>
      scf.yield %57 : i32
    }
    %c16_i32_9 = arith.constant 16 : i32
    %c0_10 = arith.constant 0 : index
    %c0_11 = arith.constant 0 : index
    %14 = vector.load %arg4[%c0_10, %c0_11] : memref<3x16xf32, #tpu.memory_space<vmem>>, vector<3x16xf32>
    %c0_12 = arith.constant 0 : index
    %c0_13 = arith.constant 0 : index
    %c0_14 = arith.constant 0 : index
    %15 = vector.load %arg2[%c0_12, %c0_13, %c0_14] : memref<1x3x16xf32, #tpu.memory_space<vmem>>, vector<1x3x16xf32>
    %16 = vector.shape_cast %15 : vector<1x3x16xf32> to vector<3x16xf32>
    %17 = vector.shape_cast %14 : vector<3x16xf32> to vector<1x3x16xf32>
    tpu.vector_store %arg2[%c0_12, %c0_13, %c0_14], %17 {strides = array<i32>} : memref<1x3x16xf32, #tpu.memory_space<vmem>>, vector<1x3x16xf32>,
    return
  }
  func.func @transform_0(%arg0: i32) -> (i32, i32, i32, i32) {
    %c0_i32 = arith.constant 0 : i32
    %c0_i32_0 = arith.constant 0 : i32
    %c0_i32_1 = arith.constant 0 : i32
    %c0_i32_2 = arith.constant 0 : i32
    return %arg0, %c0_i32, %c0_i32_0, %c0_i32_1 : i32, i32, i32, i32
  }
  func.func @transform_1(%arg0: i32) -> (i32, i32, i32) {
    %c0_i32 = arith.constant 0 : i32
    %c0_i32_0 = arith.constant 0 : i32
    %c0_i32_1 = arith.constant 0 : i32
    return %arg0, %c0_i32, %c0_i32_0 : i32, i32, i32
  }
}

</mosaic_0001>

<bundles_post_ra>
// kernel: tpu_custom_call.1
= control target key start
LH: loop header
LB: loop body
LE: loop exit
PB: predicated region body
PF: predicated region fallthrough
CT: control target
= control target key end

     0   :  { %6 = vsyncpa [#allocation5], 0  ;;  %s625_s0 = inlined_call_operand.hbm [shape: f32[2,3,1,64], index: 0, kind: input, shape index: {}]   ;;  %s626_s1 = inlined_call_operand.vmem [shape: f32[2,3,16], index: 1, kind: output, shape index: {}]  }
   0x1   :  { %8 = vsyncpa [#allocation5 + $0x1], 0  ;;  %s489_s6 = smov 0   ;;  %s491_s7 = smov 0  }
   0x2   :  { %s493_s8 = smov 0   ;;  %s495_s9 = smov 0  }
   0x3 LB: > { %s508_s10 = sadd.s32 4294967295, %s465_s9   ;;  %s511_s11 = sadd.s32 1, %s465_s9   ;;  %s465_s9 = sphi %s495_s9, %s632_s9   ;;  %s461_s8 = sphi %s493_s8, %s631_s8   ;;  %s457_s7 = sphi %s491_s7, %s630_s7   ;;  %s453_s6 = sphi %s489_s6, %s629_s6  }
   0x4   : > { %s18_s12 = ssub.s32 %s465_s9, %s511_s11  ;;  %s21_s13 = sadd.s32 1, %s461_s8 }
   0x5   : > { %p19_p0 = scmp.eq.s32.totalorder %s18_s12, 0  ;;  %p28_p1 = scmp.ne.s32.totalorder %s461_s8, %s457_s7 }
   0x6   : > { %p29_p2 = scmp.eq.s32.totalorder %s465_s9, 0  ;;  %p34_p3 = scmp.ne.s32.totalorder %s457_s7, %s453_s6 }
   0x7   : > { %s521_s14 = scalar_select %p19_p0, %s461_s8, %s21_s13  }
   0x8   : > { %p30_p4 = por %p29_p2, %p28_p1  ;;  %p35_p5 = scmp.eq.s32.totalorder %s508_s10, 0 }
   0x9   : > { %p340_p6 = scmp.lt.s32.totalorder %s465_s9, 2  ;;  %s84_s16 = sand.u32 1, %s461_s8  }
   0xa   : > { %p525_p7 = por %p35_p5, %p34_p3  ;;  %s327_s17 = smul.u32 3, %s84_s16 }
   0xb   : > { %s328_s18 = smul.u32 3, %s465_s9  ;;  %p531_p8 = pnand %p340_p6, %p30_p4 }
   0xc   : > { %s88_s23 = scalar_lea.vmem [#allocation4], %s327_s17  ;;  %p323_p9 = scmp.ge.s32.totalorder %s465_s9, 1 }
   0xd   : > { %s92_s22 = scalar_lea.hbm %s625_s0, %s328_s18  ;;  %s95_s24 = sshll.u32 %s88_s23, 4  ;;  %s96_s24 = int_to_ptr.vmem [resolvable:$true] %s95_s24 }
   0xe   : > { %s93_s25 = sshll.u32 %s92_s22, 4  ;;  %s85_s26 = scalar_lea.sflag [#allocation5], %s84_s16  ;;  %s94_s25 = int_to_ptr.hbm [resolvable:$true] %s93_s25 }
   0xf   : > { %s393_s27 = sshra.s32 %s94_s25, 4  ;;  %p397_p11 = pneg %p531_p8  ;;  %s394_s27 = int_to_ptr.hbm [resolvable:$true] %s393_s27 }
  0x10   : > { %s395_s28 = scalar_lea.hbm %s394_s27, 3  ;;  %s400_s2 = scalar_lea.hbm %s625_s0, 6 }
  0x11   : > { %p396_p10 = scmp.ne.s32.totalorder %s394_s27, %s395_s28  ;;  %p401_p0 = scmp.lt.s32.totalorder %s394_s27, %s625_s0 }
  0x12   : > { %p402_p1 = scmp.lt.s32.totalorder %s400_s2, %s395_s28 }
  0x13   : > { %p398_p12 = pnand %p397_p11, %p396_p10 }
  0x14   : > { %p403_p2 = por %p402_p1, %p401_p0 }
  0x15   : > { %p399_p13 = pneg %p398_p12 }
  0x17   : > { %p404_p3 = pnand %p403_p2, %p399_p13 }
  0x19   : > { %407 = shalt.err (!%p404_p3)
}
  0x1a   : > { %s475_s5 = smov 16   ;;  %s476_s6 = smov 1  }
  0x1b   : > { %339 = dma.hbm_to_vmem [thread:$0]  (!%p531_p8), %s94_s25, 48, %s96_s24, %s85_s26, %s475_s5, %s475_s5, %s476_s6  }
  0x1c   : > { %p103_p4 = scmp.lt.s32.totalorder %s465_s9, 3 }
  0x1e   : > { %p104_p5 = pnand %p323_p9, %p103_p4 }
  0x1f   : > { %s109_s12 = sand.u32 (!%p104_p5), 1, %s457_s7  }
  0x20   : > { %107 = sbr.rel (%p104_p5) target bundleno = 671 (0x29f), region = 24  ;;  %s110_s16 = scalar_lea.sflag (!%p104_p5), [#allocation5], %s109_s12 }
  0x21   : > { %s329_s13 = smul.u32 (!%p104_p5), 3, %s109_s12 }
  0x23   : > { %s113_s17 = scalar_lea.vmem (!%p104_p5), [#allocation4], %s329_s13 }
  0x25   : > { %448 = dma.done.wait (%p525_p7), %s110_s16, 48  }
  0x26   : > { %450 = vsyncadd (%p525_p7), %s110_s16, 4294967248  ;;  %p132_p6 = scmp.lt.s32.totalorder %s508_s10, 1  ;;  %v139_v0 = vlaneseq  ;;  %vm145_vm0 = vcmask 516096   ;;  %vm147_vm1 = vcmask 124928   ;;  %v477_v1 = vmov 1e+10  }
  0x27   : > { %146 = vst.msk [vmem:[#allocation2] sm:$0x1] %vm145_vm0, %v477_v1  ;;  %v478_v4 = vmov 0.0   ;;  %v571_v7 = vld [vmem:[%s113_s17] sm:$0x1]  ;;  %s577_s20 = smov 0  }
  0x28   : > { %s634_s10 = smov (!%p132_p6, %s508_s10), 1  ;;  %v140_v2 = vshrl.u32 %v139_v0, 7  ;;  %v560_v3 = vand.u32 127, %v139_v0  ;;  %148 = vst.msk [vmem:[#allocation3] sm:$0x7] %vm147_vm1, %v478_v4  ;;  %s579_s21 = smov 0  }
  0x29   : > { %s324_s9 = sshll.u32 %s634_s10, 2  ;;  %v573_v8 = vld [vmem:[%s113_s17 + $0x1] sm:$0x1]  ;;  %v575_v9 = vld [vmem:[%s113_s17 + $0x2] sm:$0x1] }
  0x2a   : > { %v141_v5 = vmul.u32 64, %v140_v2  ;;  %s566_s19 = scalar_lea.vmem %s626_s1, %s324_s9 }
  0x2c   : > { %v569_v6 = vadd.s32 %v560_v3, %v141_v5 }
  0x2d LB: >> { %v156_v10 = vstv %s469_s20  ;;  %v175_v21 = vstv %s473_s21  ;;  %vm186_vm3 = vcmask 1041409   ;;  %vm188_vm4 = vcmask 1042434   ;;  %s154_s21 = sadd.s32 1, %s473_s21   ;;  %s473_s21 = sphi %s579_s21, %s154_s21   ;;  %s469_s20 = sphi %s577_s20, %s333_s20  }
  0x2e   : >> { %vm157_vm2 = vcmp.eq.s32.totalorder %v569_v6, %v156_v10  ;;  %vm176_vm5 = vcmp.eq.s32.totalorder %v560_v3, %v175_v21  ;;  %v204_v38 = vld [vmem:[#allocation2] sm:$0x1]  ;;  %p151_p7 = scmp.ge.s32.totalorder %s154_s21, 16  }
  0x2f   : >> { %v160_v11 = vsel %vm157_vm2, %v571_v7, 0.0  ;;  %v162_v12 = vsel %vm157_vm2, %v575_v9, 0.0  ;;  %v161_v15 = vsel %vm157_vm2, %v573_v8, 0.0  ;;  %v177_v29 = vld [vmem:[#allocation3] sm:$0x7] }
  0x30   : >> { %v163_v13 = vsel %vm145_vm0, %v160_v11, 0.0  ;;  %v169_v14 = vsel %vm145_vm0, %v162_v12, 0.0  ;;  %v166_v16 = vsel %vm145_vm0, %v161_v15, 0.0 }
  0x31   : >> { %164 = vadd.xlane.f32.xlu0 %v163_v13  ;;  %170 = vadd.xlane.f32.xlu1 %v169_v14 }
  0x39   : >> { %167 = vadd.xlane.f32.xlu0 %v166_v16 }
  0xa4   : >> { %v165_v17 = vpop.xlane.xlu0 %164  ;;  %v171_v18 = vpop.xlane.xlu1 %170 }
  0xa5   : >> { %v193_v19 = vsub.f32 %v571_v7, %v165_v17  ;;  %v195_v20 = vsub.f32 %v575_v9, %v171_v18  ;;  %v180_v22 = vperm.slane %v165_v17, 0  ;;  %v182_v24 = vperm.slane %v171_v18, 0 }
  0xa7   : >> { %v196_v25 = vmul.f32 %v193_v19, %v193_v19  ;;  %v198_v28 = vmul.f32 %v195_v20, %v195_v20 }
  0xa9   : >> { %v199_v33 = vsel %vm145_vm0, %v196_v25, 0.0  ;;  %v202_v36 = vsel %vm145_vm0, %v198_v28, 0.0 }
  0xac   : >> { %v168_v23 = vpop.xlane.xlu0 %167 }
  0xad   : >> { %v181_v26 = vperm.slane %v168_v23, 0  ;;  %v194_v27 = vsub.f32 %v573_v8, %v168_v23 }
  0xaf   : >> { %v187_v30 = vsel %vm186_vm3, %v181_v26, %v180_v22  ;;  %v197_v31 = vmul.f32 %v194_v27, %v194_v27 }
  0xb0   : >> { %v189_v32 = vsel %vm188_vm4, %v182_v24, %v187_v30 }
  0xb1   : >> { %v200_v34 = vsel %vm145_vm0, %v197_v31, 0.0  ;;  %v191_v35 = vsel %vm176_vm5, %v189_v32, %v177_v29 }
  0xb2   : >> { %v201_v37 = vadd.f32 %v200_v34, %v199_v33  ;;  %192 = vst.msk [vmem:[#allocation3] sm:$0x7] %vm147_vm1, %v191_v35 }
  0xb4   : >> { %v203_v39 = vadd.f32 %v202_v36, %v201_v37 }
  0xb6   : >> { %v205_v40 = vmin.f32 %v204_v38, %v203_v39 }
  0xb8   : >> { %v207_v41 = vsel %vm145_vm0, %v205_v40, -inf  ;;  %206 = vst.msk [vmem:[#allocation2] sm:$0x1] %vm145_vm0, %v205_v40 }
  0xb9   : >> { %208 = vmax.xlane.f32.xlu1 %v207_v41  ;;  %v245_v10 = vld [vmem:[#allocation3] sm:$0x7] (%p151_p7) }
  0xba   : > { %246 = vst.msk [vmem:[%s566_s19] sm:$0x7] (%p151_p7), %vm147_vm1, %v245_v10 }
 0x12c   : >> { %v209_v42 = vpop.xlane.xlu1 %208 }
 0x12d   : >> { %v210_v43 = vrot.slane %v209_v42, 4 }
 0x12f   : >> { %v211_v44 = vmax.f32 %v209_v42, %v210_v43 }
 0x131   : >> { %v212_v45 = vrot.slane %v211_v44, 2 }
 0x133   : >> { %v213_v46 = vmax.f32 %v211_v44, %v212_v45 }
 0x135   : >> { %v214_v47 = vrot.slane %v213_v46, 1 }
 0x137   : >> { %v215_v48 = vmax.f32 %v213_v46, %v214_v47 }
 0x139   : >> { %330 = vpush %v215_v48 }
 0x16a   : >> { %s331_s10 = spop %330 }
 0x16b   : >> { %v217_v49 = vstv %s331_s10 }
 0x16c   : >> { %vm218_vm6 = vcmp.eq.f32.partialorder %v205_v40, %v217_v49 }
 0x16d   : >> { %v219_v50 = vsel %vm218_vm6, %v569_v6, 64 }
 0x16e   : >> { %v220_v51 = vsel %vm145_vm0, %v219_v50, 2147483647 }
 0x16f   : >> { %v222_v52 = vshra.s32 %v220_v51, 16  ;;  %v221_v54 = vand.u32 65535, %v220_v51 }
 0x171   : >> { %v224_v53 = vcvt.s32.f32 %v222_v52  ;;  %v223_v56 = vcvt.s32.f32 %v221_v54 }
 0x173   : >> { %225 = vmin.xlane.f32.xlu2 %v224_v53 }
 0x1e6   : >> { %v226_v55 = vpop.xlane.xlu2 %225 }
 0x1e7   : >> { %vm227_vm7 = vcmp.eq.f32.partialorder %v224_v53, %v226_v55  ;;  %v232_v58 = vcvt.f32.s32 %v226_v55 }
 0x1e8   : >> { %v228_v57 = vsel %vm227_vm7, %v223_v56, inf }
 0x1e9   : >> { %229 = vmin.xlane.f32.xlu2 %v228_v57  ;;  %v233_v60 = vshll.u32 %v232_v58, 16 }
 0x25c   : >> { %v230_v59 = vpop.xlane.xlu2 %229 }
 0x25d   : >> { %v231_v61 = vcvt.f32.s32 %v230_v59 }
 0x25f   : >> { %v234_v62 = vadd.s32 %v233_v60, %v231_v61 }
 0x261   : >> { %v235_v63 = vrot.slane %v234_v62, 4 }
 0x263   : >> { %vm236_vm8 = vcmp.lt.s32.totalorder %v234_v62, %v235_v63 }
 0x264   : >> { %v237_v0 = vsel %vm236_vm8, %v234_v62, %v235_v63 }
 0x265   : >> { %v238_v1 = vrot.slane %v237_v0, 2 }
 0x267   : >> { %vm239_vm9 = vcmp.lt.s32.totalorder %v237_v0, %v238_v1 }
 0x268   : >> { %v240_v2 = vsel %vm239_vm9, %v237_v0, %v238_v1 }
 0x269   : >> { %v241_v4 = vrot.slane %v240_v2, 1 }
 0x26b   : >> { %vm242_vm10 = vcmp.lt.s32.totalorder %v240_v2, %v241_v4 }
 0x26c   : >> { %v243_v5 = vsel %vm242_vm10, %v240_v2, %v241_v4 }
 0x26d   : >> { %332 = vpush %v243_v5 }
 0x29a   : > { %153 = sbr.rel (!%p151_p7) target bundleno = 45 (0x2d), region = 71 }
 0x29e   : >> { %s333_s20 = spop %332  }
 0x29f PF: > { %p11_p8 = scmp.ge.s32.totalorder %s511_s11, 4   ;;  %s629_s6 = smov %s457_s7 }
 0x2a0   : > { %s630_s7 = smov %s461_s8  ;;  %s631_s8 = smov %s521_s14 }
 0x2a1   : > { %s632_s9 = smov %s511_s11  ;;  %13 = sbr.rel (!%p11_p8) target bundleno = 3 (0x3), region = 82 }
 0x2a6   :  { %266 = vsyncpa [#allocation5], 1 }
 0x2a7   :  { %268 = vsyncpa [#allocation5 + $0x1], 1 }

</bundles_post_ra>
